<compile_context>
chip_gen: v7x
topology: tpu7x:2x2x1
jax: 0.10.0
libtpu: 0.0.40
codegen_flags: <defaults>
</compile_context>

<pallas_src>
import jax
import jax.numpy as jnp
from jax.experimental import pallas as pl
from jax.experimental.pallas import tpu as pltpu

_LANE = 128
_MAX_ROWS = 2048          # rows (of 128 lanes) per spatial tile: 3 MiB in / 1 MiB out
_MIN_ROWS_PER_STEP = 256  # batch small samples until a step covers ~this many rows


def _conv1x1_sigmoid_kernel(wb_ref, x_ref, o_ref):
    # wb_ref: SMEM (4,) = [w0, w1, w2, b]  (scalar-prefetched)
    # x_ref : VMEM (BN, 3, TR, 128)        o_ref: VMEM (BN, 1, TR, 128)
    y = (x_ref[:, 0] * wb_ref[0]
         + x_ref[:, 1] * wb_ref[1]
         + x_ref[:, 2] * wb_ref[2]
         + wb_ref[3])
    o_ref[:, 0] = jax.nn.sigmoid(y).astype(o_ref.dtype)


def dummy_model_forward(x_nchw, weight, bias):
    """Forward of dummyModel: sigmoid(Conv2d(3->1, 1x1)(x)).

    x_nchw: (N, 3, H, W) f32; weight: (1, 3, 1, 1); bias: (1,).
    Returns: (N, 1, H, W) f32.
    """
    N, C, H, W = x_nchw.shape
    assert C == 3
    HW = H * W
    hw_lane = pl.cdiv(HW, _LANE) * _LANE      # pad only to the next lane multiple
    rows = hw_lane // _LANE

    x3 = x_nchw.astype(jnp.float32).reshape(N, C, HW)   # free reshape, NCHW kept
    if hw_lane != HW:
        x3 = jnp.pad(x3, ((0, 0), (0, 0), (0, hw_lane - HW)))
    x4 = x3.reshape(N, C, rows, _LANE)                   # free reshape (lane-dense view)

    # Tile selection: dense (TR, 128) spatial tiles; batch BN samples per step
    # when rows is small so the per-step overhead is amortized.
    if rows >= _MAX_ROWS:
        tr, bn = _MAX_ROWS, 1
    else:
        tr = rows
        bn = min(N, max(1, _MIN_ROWS_PER_STEP // rows))

    grid = (pl.cdiv(N, bn), pl.cdiv(rows, tr))

    # Weights + bias as 4 scalars, prefetched to SMEM once.
    wb = jnp.concatenate(
        [weight.reshape(C).astype(jnp.float32),
         bias.reshape(1).astype(jnp.float32)])

    out4 = pl.pallas_call(
        _conv1x1_sigmoid_kernel,
        out_shape=jax.ShapeDtypeStruct((N, 1, rows, _LANE), jnp.float32),
        grid_spec=pltpu.PrefetchScalarGridSpec(
            num_scalar_prefetch=1,
            grid=grid,
            in_specs=[
                pl.BlockSpec((bn, C, tr, _LANE), lambda n, r, _wb: (n, 0, r, 0)),
            ],
            out_specs=pl.BlockSpec((bn, 1, tr, _LANE), lambda n, r, _wb: (n, 0, r, 0)),
        ),
        compiler_params=pltpu.CompilerParams(
            dimension_semantics=("parallel", "parallel"),
        ),
    )(wb, x4)

    if hw_lane == HW:
        return out4.reshape(N, 1, H, W)                  # free reshape
    # Non-aligned spatial extent: drop lane padding (one slice copy).
    return out4.reshape(N, 1, hw_lane)[:, :, :HW].reshape(N, 1, H, W)


def _reference(x, weight, bias):
    return jax.nn.sigmoid(
        jnp.einsum("nchw,oc->nohw", x, weight.reshape(1, 3))
        + bias[None, :, None, None])


if __name__ == "__main__":
    key = jax.random.PRNGKey(0)
    kx, kw, kb, kx2 = jax.random.split(key, 4)

    # Conv2d(3, 1, kernel_size=1) parameter shapes.
    weight = jax.random.normal(kw, (1, 3, 1, 1), dtype=jnp.float32) * 0.1
    bias = jax.random.normal(kb, (1,), dtype=jnp.float32) * 0.1

    # Small shapes consistent with the module: batch=2, C=3, 16x16 spatial.
    N, C, H, W = 2, 3, 16, 16
    x = jax.random.normal(kx, (N, C, H, W), dtype=jnp.float32)
    out = jax.block_until_ready(dummy_model_forward(x, weight, bias))
    ref = _reference(x, weight, bias)
    assert out.shape == (N, 1, H, W)
    assert jnp.allclose(out, ref, atol=1e-5, rtol=1e-5)

    # Non-lane-aligned spatial extent (exercises the padded/ragged path).
    x2 = jax.random.normal(kx2, (2, 3, 10, 10), dtype=jnp.float32)
    out2 = jax.block_until_ready(dummy_model_forward(x2, weight, bias))
    ref2 = _reference(x2, weight, bias)
    assert out2.shape == (2, 1, 10, 10)
    assert jnp.allclose(out2, ref2, atol=1e-5, rtol=1e-5)

    print("KERNEL_OK")
</pallas_src>

<mosaic_0001>
module attributes {stable_mosaic.version = 11 : i64} {
  func.func @_conv1x1_sigmoid_kernel(%arg0: i32, %arg1: i32, %arg2: memref<4xf32, #tpu.memory_space<smem>>, %arg3: memref<2x3x2x128xf32, #tpu.memory_space<vmem>>, %arg4: memref<2x1x2x128xf32, #tpu.memory_space<vmem>>) attributes {dimension_semantics = [#tpu.dimension_semantics<parallel>, #tpu.dimension_semantics<parallel>], iteration_bounds = array<i64: 1, 1>, scalar_prefetch = 1 : i64, scratch_operands = 0 : i64, tpu.core_type = #tpu.core_type<tc>, window_params = [{transform_indices = @transform_0, window_bounds = array<i64: 2, 3, 2, 128>}, {transform_indices = @transform_1, window_bounds = array<i64: 2, 1, 2, 128>}]} {
    %c0 = arith.constant 0 : index
    %c0_0 = arith.constant 0 : index
    %c0_1 = arith.constant 0 : index
    %c0_2 = arith.constant 0 : index
    %0 = vector.load %arg3[%c0, %c0_0, %c0_1, %c0_2] : memref<2x3x2x128xf32, #tpu.memory_space<vmem>>, vector<2x1x2x128xf32>
    %1 = vector.shape_cast %0 : vector<2x1x2x128xf32> to vector<2x2x128xf32>
    %c0_3 = arith.constant 0 : index
    %2 = memref.load %arg2[%c0_3] : memref<4xf32, #tpu.memory_space<smem>>
    %3 = vector.broadcast %2 : f32 to vector<2x2x128xf32>
    %4 = arith.mulf %1, %3 : vector<2x2x128xf32>
    %c0_4 = arith.constant 0 : index
    %c1 = arith.constant 1 : index
    %c0_5 = arith.constant 0 : index
    %c0_6 = arith.constant 0 : index
    %5 = vector.load %arg3[%c0_4, %c1, %c0_5, %c0_6] : memref<2x3x2x128xf32, #tpu.memory_space<vmem>>, vector<2x1x2x128xf32>
    %6 = vector.shape_cast %5 : vector<2x1x2x128xf32> to vector<2x2x128xf32>
    %c1_7 = arith.constant 1 : index
    %7 = memref.load %arg2[%c1_7] : memref<4xf32, #tpu.memory_space<smem>>
    %8 = vector.broadcast %7 : f32 to vector<2x2x128xf32>
    %9 = arith.mulf %6, %8 : vector<2x2x128xf32>
    %10 = arith.addf %4, %9 : vector<2x2x128xf32>
    %c0_8 = arith.constant 0 : index
    %c2 = arith.constant 2 : index
    %c0_9 = arith.constant 0 : index
    %c0_10 = arith.constant 0 : index
    %11 = vector.load %arg3[%c0_8, %c2, %c0_9, %c0_10] : memref<2x3x2x128xf32, #tpu.memory_space<vmem>>, vector<2x1x2x128xf32>
    %12 = vector.shape_cast %11 : vector<2x1x2x128xf32> to vector<2x2x128xf32>
    %c2_11 = arith.constant 2 : index
    %13 = memref.load %arg2[%c2_11] : memref<4xf32, #tpu.memory_space<smem>>
    %14 = vector.broadcast %13 : f32 to vector<2x2x128xf32>
    %15 = arith.mulf %12, %14 : vector<2x2x128xf32>
    %16 = arith.addf %10, %15 : vector<2x2x128xf32>
    %c3 = arith.constant 3 : index
    %17 = memref.load %arg2[%c3] : memref<4xf32, #tpu.memory_space<smem>>
    %18 = vector.broadcast %17 : f32 to vector<2x2x128xf32>
    %19 = arith.addf %16, %18 : vector<2x2x128xf32>
    %20 = arith.negf %19 : vector<2x2x128xf32>
    %21 = math.exp %20 : vector<2x2x128xf32>
    %cst = arith.constant 1.000000e+00 : f32
    %22 = vector.broadcast %cst : f32 to vector<2x2x128xf32>
    %23 = arith.addf %22, %21 : vector<2x2x128xf32>
    %24 = arith.divf %22, %23 : vector<2x2x128xf32>
    %c0_12 = arith.constant 0 : index
    %c0_13 = arith.constant 0 : index
    %c0_14 = arith.constant 0 : index
    %c0_15 = arith.constant 0 : index
    %25 = vector.load %arg4[%c0_12, %c0_13, %c0_14, %c0_15] : memref<2x1x2x128xf32, #tpu.memory_space<vmem>>, vector<2x1x2x128xf32>
    %26 = vector.shape_cast %25 : vector<2x1x2x128xf32> to vector<2x2x128xf32>
    %27 = vector.shape_cast %24 : vector<2x2x128xf32> to vector<2x1x2x128xf32>
    tpu.vector_store %arg4[%c0_12, %c0_13, %c0_14, %c0_15], %27 {strides = array<i32>} : memref<2x1x2x128xf32, #tpu.memory_space<vmem>>, vector<2x1x2x128xf32>,
    return
  }
  func.func @transform_0(%arg0: i32, %arg1: i32, %arg2: memref<4xf32, #tpu.memory_space<smem>>) -> (i32, i32, i32, i32) {
    %c0_i32 = arith.constant 0 : i32
    %c0_i32_0 = arith.constant 0 : i32
    %c0_i32_1 = arith.constant 0 : i32
    return %arg0, %c0_i32, %arg1, %c0_i32_0 : i32, i32, i32, i32
  }
  func.func @transform_1(%arg0: i32, %arg1: i32, %arg2: memref<4xf32, #tpu.memory_space<smem>>) -> (i32, i32, i32, i32) {
    %c0_i32 = arith.constant 0 : i32
    %c0_i32_0 = arith.constant 0 : i32
    %c0_i32_1 = arith.constant 0 : i32
    return %arg0, %c0_i32, %arg1, %c0_i32_0 : i32, i32, i32, i32
  }
}

</mosaic_0001>

<bundles_post_ra>
// kernel: tpu_custom_call.1
= control target key start
LH: loop header
LB: loop body
LE: loop exit
PB: predicated region body
PF: predicated region fallthrough
CT: control target
= control target key end

     0   :  { %s227_s0 = inlined_call_operand.hbm [shape: f32[4], index: 0, kind: input, shape index: {}]   ;;  %s228_s1 = inlined_call_operand.hbm [shape: f32[2,3,2,128], index: 1, kind: input, shape index: {}]   ;;  %s229_s2 = inlined_call_operand.hbm [shape: f32[2,1,2,128], index: 2, kind: output, shape index: {}]  }
   0x1   :  { %s105_s11 = scalar_lea.hbm %s227_s0, 16 }
   0x2   :  { %p106_p0 = scmp.ne.s32.totalorder %s227_s0, %s105_s11  ;;  %p109_p1 = scmp.lt.u32.totalorder %s105_s11, %s227_s0 }
   0x4   :  { %p111_p2 = pnand %p109_p1, %p106_p0 }
   0x6   :  { %114 = shalt.err (!%p111_p2)  }
   0x7   :  { %s165_s16 = smov [#allocation3]  }
   0x8   :  { %8 = dma.hbm_to_smem %s227_s0, 16, %s165_s16, [#allocation2] }
   0x9   :  { %159 = dma.done.wait [#allocation2], 16 }
   0xa   :  { %160 = vsyncadd [#allocation2], 4294967280 }
   0xb   :  { %10 = sfence }
   0xc   :  { %11 = vsyncpa [#allocation5], 0 }
   0xd   :  { %12 = vsyncpa [#allocation6], 0  ;;  %s166_s19 = smov [#allocation4]   ;;  %s115_s23 = scalar_lea.hbm %s228_s1, 192 }
   0xe   :  { %s18_s20 = sshll.u32 %s166_s19, 4  ;;  %p116_p3 = scmp.ne.s32.totalorder %s228_s1, %s115_s23  ;;  %s19_s20 = int_to_ptr.vmem [resolvable:$true] %s18_s20 }
   0xf   :  { %p119_p4 = scmp.lt.u32.totalorder %s115_s23, %s228_s1 }
  0x11   :  { %p121_p5 = pnand %p119_p4, %p116_p3 }
  0x13   :  { %124 = shalt.err (!%p121_p5)
}
  0x14   :  { %s125_s0 = scalar_lea.vmem %s19_s20, 192  ;;  %p130_p7 = scmp.lt.s32.totalorder %s19_s20, %s19_s20 }
  0x15   :  { %p126_p6 = scmp.ne.s32.totalorder %s19_s20, %s125_s0  ;;  %p131_p8 = scmp.lt.s32.totalorder %s125_s0, %s125_s0 }
  0x17   :  { %p132_p9 = por %p131_p8, %p130_p7 }
  0x19   :  { %p133_p10 = pnand %p132_p9, %p126_p6 }
  0x1b   :  { %136 = shalt.err (!%p133_p10)
}
  0x1c   :  { %s167_s28 = smov 32   ;;  %s168_s29 = smov 2  }
  0x1d   :  { %24 = dma.hbm_to_vmem [thread:$0]  %s228_s1, 192, %s19_s20, [#allocation5], %s167_s28, %s167_s28, %s168_s29  }
  0x1e   :  { %161 = dma.done.wait [#allocation5], 192  }
  0x1f   :  { %162 = vsyncadd [#allocation5], 4294967104  ;;  %s30_s4 = sld [smem:[#allocation3]]  ;;  %s87_s5 = sld [smem:[#allocation3 + $0x1]]  ;;  %v28_v0 = vld [vmem:[#allocation4] sm:$0x3] }
  0x20   :  { %s88_s6 = sld [smem:[#allocation3 + $0x2]]  ;;  %s89_s7 = sld [smem:[#allocation3 + $0x3]]  ;;  %v35_v2 = vld [vmem:[#allocation4 + $0x2] sm:$0x3]  ;;  %v44_v4 = vld [vmem:[#allocation4 + $0x4] sm:$0x3] }
  0x21   :  { %v29_v8 = vld [vmem:[#allocation4 + $0x6] sm:$0x3]  ;;  %v36_v9 = vld [vmem:[#allocation4 + $0x8] sm:$0x3]  ;;  %v45_v10 = vld [vmem:[#allocation4 + $0xa] sm:$0x3] }
  0x22   :  { %s169_s1 = smov [#allocation7]  }
  0x23   :  { %s75_s8 = sshll.u32 %s169_s1, 4  ;;  %s76_s8 = int_to_ptr.vmem [resolvable:$true] %s75_s8 }
  0x24   :  { %s137_s9 = scalar_lea.vmem %s76_s8, 64  ;;  %p142_p12 = scmp.lt.s32.totalorder %s76_s8, %s76_s8 }
  0x25   :  { %v31_v1 = vstv %s30_s4  ;;  %v38_v3 = vstv %s87_s5  ;;  %p138_p11 = scmp.ne.s32.totalorder %s76_s8, %s137_s9  ;;  %p143_p13 = scmp.lt.s32.totalorder %s137_s9, %s137_s9 }
  0x26   :  { %v32_v5 = vmul.f32 %v31_v1, %v28_v0  ;;  %v39_v6 = vmul.f32 %v38_v3, %v35_v2  ;;  %v47_v7 = vstv %s88_s6  ;;  %v33_v12 = vmul.f32 %v31_v1, %v29_v8 }
  0x27   :  { %v48_v11 = vmul.f32 %v47_v7, %v44_v4  ;;  %v40_v13 = vmul.f32 %v38_v3, %v36_v9  ;;  %v49_v14 = vmul.f32 %v47_v7, %v45_v10  ;;  %v53_v16 = vstv %s89_s7  ;;  %p144_p0 = por %p143_p13, %p142_p12 }
  0x28   :  { %v41_v15 = vadd.f32 %v39_v6, %v32_v5 }
  0x29   :  { %v42_v17 = vadd.f32 %v40_v13, %v33_v12  ;;  %p145_p1 = pnand %p144_p0, %p138_p11 }
  0x2a   :  { %v50_v18 = vadd.f32 %v48_v11, %v41_v15 }
  0x2b   :  { %v51_v19 = vadd.f32 %v49_v14, %v42_v17 }
  0x2c   :  { %v54_v20 = vadd.f32 %v53_v16, %v50_v18 }
  0x2d   :  { %v55_v21 = vadd.f32 %v53_v16, %v51_v19 }
  0x2e   :  { %v90_v22 = vmul.f32 -1.442695, %v54_v20 }
  0x2f   :  { %v91_v23 = vmul.f32 -1.442695, %v55_v21 }
  0x30   :  { %97 = vpow2.f32 %v90_v22 }
  0x31   :  { %99 = vpow2.f32 %v91_v23 }
  0x3a   :  { %v98_v24 = vpop.eup %97 }
  0x3b   :  { %v100_v25 = vpop.eup %99  ;;  %v62_v26 = vadd.f32 1.0, %v98_v24 }
  0x3c   :  { %v63_v27 = vadd.f32 1.0, %v100_v25 }
  0x3d   :  { %101 = vrcp.f32 %v62_v26 }
  0x3e   :  { %103 = vrcp.f32 %v63_v27 }
  0x47   :  { %v102_v28 = vpop.eup %101 }
  0x48   :  { %v104_v29 = vpop.eup %103  ;;  %68 = vst [vmem:[#allocation7] sm:$0x3] %v102_v28 }
  0x49   :  { %69 = vst [vmem:[#allocation7 + $0x2] sm:$0x3] %v104_v29 }
  0x4a   :  { %148 = shalt.err (!%p145_p1)
}
  0x4b   :  { %s149_s12 = scalar_lea.hbm %s229_s2, 64 }
  0x4c   :  { %p150_p2 = scmp.ne.s32.totalorder %s229_s2, %s149_s12  ;;  %p153_p3 = scmp.lt.u32.totalorder %s149_s12, %s229_s2 }
  0x4e   :  { %p155_p4 = pnand %p153_p3, %p150_p2 }
  0x50   :  { %158 = shalt.err (!%p155_p4)
}
  0x51   :  { %81 = dma.vmem_to_hbm [thread:$0]  %s76_s8, 64, %s229_s2, [#allocation6], %s167_s28, %s167_s28, %s168_s29  }
  0x52   :  { %163 = dma.done.wait [#allocation6], 64  }
  0x53   :  { %164 = vsyncadd [#allocation6], 4294967232 }
  0x54   :  { %85 = vsyncpa [#allocation5], 1 }
  0x55   :  { %86 = vsyncpa [#allocation6], 1 }

</bundles_post_ra>
